<compile_context>
chip_gen: v6e
topology: v6e:2x2x1
jax: 0.10.0
libtpu: 0.0.40
codegen_flags: <defaults>
</compile_context>

<pallas_src>
import jax
import jax.numpy as jnp
from jax.experimental import pallas as pl
from jax.experimental.pallas import tpu as pltpu


def _readout_kernel(x_ref, wt_ref, b_ref, o_ref):
    # x_ref : (TB, N, D)  block of batch rows
    # wt_ref: (D, Mp)     pre-transposed weight (full, resident)
    # b_ref : (1, Mp)     bias (full, resident)
    # o_ref : (TB, Mp)    output block
    x = x_ref[...]                                        # (TB, N, D) f32
    n = x.shape[1]
    # Streaming reduction over the node/seq axis, f32 accumulation.
    x_mean = jnp.sum(x, axis=1) * (1.0 / n)               # (TB, D)
    # Single tiny matmul on the reduced representation.
    h = jnp.dot(x_mean, wt_ref[...],
                preferred_element_type=jnp.float32)       # (TB, Mp)
    o_ref[...] = (h + b_ref[...]).astype(o_ref.dtype)     # bias added once per row


def _round_up(x, m):
    return ((x + m - 1) // m) * m


def readout_pallas(output_H, weight, bias, *, block_b=None):
    """output_H: (B, N, D) f32; weight: (M, D); bias: (M,) -> (B, M)."""
    B, N, D = output_H.shape
    M = weight.shape[0]

    # --- pad feature (lane) dim of the output to a multiple of 128 -----------
    Mp = _round_up(max(M, 1), 128)
    w_t = jnp.transpose(weight)                           # (D, M), one-time XLA op
    w_t = jnp.pad(w_t, ((0, 0), (0, Mp - M)))             # (D, Mp)
    bias2d = jnp.pad(bias.reshape(1, M), ((0, 0), (0, Mp - M)))   # (1, Mp)

    # --- choose a batch tile (multiple of 8, VMEM-safe for v5e/v6e/v7x) ------
    if block_b is None:
        # ~4 MiB per x block => ~8 MiB double-buffered; well under the 32 MiB
        # default scoped VMEM limit (and v7x's 64 MiB physical VMEM).
        budget_bytes = 4 * 1024 * 1024
        per_row = max(N * D * output_H.dtype.itemsize, 1)
        block_b = max(8, min(512, (budget_bytes // per_row) // 8 * 8))
    # Don't over-pad a tiny batch: clamp to round_up(B, 8).
    block_b = int(min(block_b, _round_up(B, 8)))
    block_b = max(8, (block_b // 8) * 8)

    B_pad = _round_up(B, block_b)
    x = output_H
    if B_pad != B:
        x = jnp.pad(x, ((0, B_pad - B), (0, 0), (0, 0)))

    grid = (B_pad // block_b,)

    out = pl.pallas_call(
        _readout_kernel,
        out_shape=jax.ShapeDtypeStruct((B_pad, Mp), output_H.dtype),
        grid_spec=pltpu.PrefetchScalarGridSpec(
            num_scalar_prefetch=0,
            grid=grid,
            in_specs=[
                pl.BlockSpec((block_b, N, D), lambda i: (i, 0, 0)),
                pl.BlockSpec((D, Mp), lambda i: (0, 0)),
                pl.BlockSpec((1, Mp), lambda i: (0, 0)),
            ],
            out_specs=pl.BlockSpec((block_b, Mp), lambda i: (i, 0)),
        ),
        compiler_params=pltpu.CompilerParams(
            dimension_semantics=("parallel",),
            vmem_limit_bytes=64 * 1024 * 1024,
        ),
    )(x, w_t, bias2d)

    return out[:B, :M]


def init_readout_params(key, out_dim, molvec_dim):
    """Deterministic synthetic params matching nn.Linear(out_dim, molvec_dim)
    with xavier_normal_ on the weight (PyTorch default bias init approximated)."""
    kw, kb = jax.random.split(key)
    std = (2.0 / (out_dim + molvec_dim)) ** 0.5
    weight = std * jax.random.normal(kw, (molvec_dim, out_dim), dtype=jnp.float32)
    bound = 1.0 / (out_dim ** 0.5)
    bias = jax.random.uniform(kb, (molvec_dim,), dtype=jnp.float32,
                              minval=-bound, maxval=bound)
    return weight, bias


if __name__ == "__main__":
    key = jax.random.PRNGKey(0)
    k_x, k_p = jax.random.split(key)

    B, N, out_dim, molvec_dim = 2, 8, 32, 16
    output_H = jax.random.normal(k_x, (B, N, out_dim), dtype=jnp.float32)
    weight, bias = init_readout_params(k_p, out_dim, molvec_dim)

    molvec = readout_pallas(output_H, weight, bias)
    molvec = jax.block_until_ready(molvec)

    # Pure-JAX reference check (matmul-then-mean, same as the PyTorch module).
    ref = jnp.mean(jnp.einsum("bnd,md->bnm", output_H, weight) + bias, axis=1)
    assert molvec.shape == (B, molvec_dim)
    assert jnp.allclose(molvec, ref, atol=1e-5, rtol=1e-5)

    print("KERNEL_OK")
</pallas_src>

<mosaic_0001>
module attributes {stable_mosaic.version = 11 : i64} {
  func.func @_readout_kernel(%arg0: i32, %arg1: memref<8x8x32xf32, #tpu.memory_space<vmem>>, %arg2: memref<32x128xf32, #tpu.memory_space<vmem>>, %arg3: memref<1x128xf32, #tpu.memory_space<vmem>>, %arg4: memref<8x128xf32, #tpu.memory_space<vmem>>) attributes {dimension_semantics = [#tpu.dimension_semantics<parallel>], iteration_bounds = array<i64: 1>, scalar_prefetch = 0 : i64, scratch_operands = 0 : i64, tpu.core_type = #tpu.core_type<tc>, window_params = [{transform_indices = @transform_0, window_bounds = array<i64: 8, 8, 32>}, {pipeline_mode = #tpu.pipeline_mode<synchronous>, transform_indices = @transform_1, window_bounds = array<i64: 32, 128>}, {pipeline_mode = #tpu.pipeline_mode<synchronous>, transform_indices = @transform_2, window_bounds = array<i64: 1, 128>}, {transform_indices = @transform_3, window_bounds = array<i64: 8, 128>}]} {
    %c0 = arith.constant 0 : index
    %c0_0 = arith.constant 0 : index
    %c0_1 = arith.constant 0 : index
    %0 = vector.load %arg1[%c0, %c0_0, %c0_1] : memref<8x8x32xf32, #tpu.memory_space<vmem>>, vector<8x8x32xf32>
    %cst = arith.constant dense<0.000000e+00> : vector<8x32xf32>
    %1 = vector.multi_reduction <add>, %0, %cst [1] : vector<8x8x32xf32> to vector<8x32xf32>
    %cst_2 = arith.constant 1.250000e-01 : f32
    %2 = vector.broadcast %cst_2 : f32 to vector<8x32xf32>
    %3 = arith.mulf %1, %2 : vector<8x32xf32>
    %c0_3 = arith.constant 0 : index
    %c0_4 = arith.constant 0 : index
    %4 = vector.load %arg2[%c0_3, %c0_4] : memref<32x128xf32, #tpu.memory_space<vmem>>, vector<32x128xf32>
    %cst_5 = arith.constant dense<0.000000e+00> : vector<8x128xf32>
    %5 = tpu.matmul %3, %4, %cst_5 {dimension_numbers = #tpu.dot_dimension_numbers<[1], [0], [0], [1], [0, 0, 1, 1], [], []>} : vector<8x32xf32>, vector<32x128xf32>, vector<8x128xf32> -> vector<8x128xf32>
    %c0_6 = arith.constant 0 : index
    %c0_7 = arith.constant 0 : index
    %6 = vector.load %arg3[%c0_6, %c0_7] : memref<1x128xf32, #tpu.memory_space<vmem>>, vector<1x128xf32>
    %7 = vector.broadcast %6 : vector<1x128xf32> to vector<8x128xf32>
    %8 = arith.addf %5, %7 : vector<8x128xf32>
    %c0_8 = arith.constant 0 : index
    %c0_9 = arith.constant 0 : index
    %9 = vector.load %arg4[%c0_8, %c0_9] : memref<8x128xf32, #tpu.memory_space<vmem>>, vector<8x128xf32>
    tpu.vector_store %arg4[%c0_8, %c0_9], %8 {strides = array<i32>} : memref<8x128xf32, #tpu.memory_space<vmem>>, vector<8x128xf32>,
    return
  }
  func.func @transform_0(%arg0: i32) -> (i32, i32, i32) {
    %c0_i32 = arith.constant 0 : i32
    %c0_i32_0 = arith.constant 0 : i32
    %c0_i32_1 = arith.constant 0 : i32
    return %arg0, %c0_i32, %c0_i32_0 : i32, i32, i32
  }
  func.func @transform_1(%arg0: i32) -> (i32, i32) {
    %c0_i32 = arith.constant 0 : i32
    %c0_i32_0 = arith.constant 0 : i32
    %c0_i32_1 = arith.constant 0 : i32
    return %c0_i32, %c0_i32_0 : i32, i32
  }
  func.func @transform_2(%arg0: i32) -> (i32, i32) {
    %c0_i32 = arith.constant 0 : i32
    %c0_i32_0 = arith.constant 0 : i32
    %c0_i32_1 = arith.constant 0 : i32
    return %c0_i32, %c0_i32_0 : i32, i32
  }
  func.func @transform_3(%arg0: i32) -> (i32, i32) {
    %c0_i32 = arith.constant 0 : i32
    %c0_i32_0 = arith.constant 0 : i32
    return %arg0, %c0_i32 : i32, i32
  }
}

</mosaic_0001>

<bundles_post_ra>
// kernel: tpu_custom_call.1
= control target key start
LH: loop header
LB: loop body
LE: loop exit
PB: predicated region body
PF: predicated region fallthrough
CT: control target
= control target key end

     0   :  { %8 = vsyncpa [#allocation3], 0  ;;  %s381_s0 = inlined_call_operand.hbm [shape: f32[8,8,32], index: 0, kind: input, shape index: {}]   ;;  %s382_s1 = inlined_call_operand.hbm [shape: f32[32,128], index: 1, kind: input, shape index: {}]   ;;  %s383_s2 = inlined_call_operand.vmem [shape: f32[1,128], index: 2, kind: input, shape index: {}]   ;;  %s384_s3 = inlined_call_operand.hbm [shape: f32[8,128], index: 3, kind: output, shape index: {}]  }
   0x1   :  { %9 = vsyncpa [#allocation6], 0 }
   0x2   :  { %10 = vsyncpa [#allocation4], 0  ;;  %s329_s12 = smov [#allocation2]  }
   0x3   :  { %s16_s13 = sshll.u32 %s329_s12, 4  ;;  %s17_s13 = int_to_ptr.vmem [resolvable:$true] %s16_s13 }
   0x4   :  { %s271_s14 = scalar_lea.vmem %s17_s13, 1024  ;;  %p276_p1 = scmp.lt.s32.totalorder %s17_s13, %s17_s13 }
   0x5   :  { %p272_p0 = scmp.ne.s32.totalorder %s17_s13, %s271_s14  ;;  %p277_p2 = scmp.lt.s32.totalorder %s271_s14, %s271_s14 }
   0x7   :  { %p278_p3 = por %p277_p2, %p276_p1 }
   0x9   :  { %p279_p4 = pnand %p278_p3, %p272_p0 }
   0xb   :  { %282 = shalt.err (!%p279_p4)
}
   0xc   :  { %s330_s15 = smov 128   ;;  %s331_s16 = smov 8  }
   0xd   :  { %22 = dma.hbm_to_vmem [thread:$0]  %s381_s0, 1024, %s17_s13, [#allocation3], %s330_s15, %s330_s15, %s331_s16  }
   0xe   :  { %s332_s19 = smov [#allocation5]  }
   0xf   :  { %s28_s20 = sshll.u32 %s332_s19, 4  ;;  %s29_s20 = int_to_ptr.vmem [resolvable:$true] %s28_s20 }
  0x10   :  { %s291_s21 = scalar_lea.vmem %s29_s20, 512  ;;  %p296_p6 = scmp.lt.s32.totalorder %s29_s20, %s29_s20 }
  0x11   :  { %p292_p5 = scmp.ne.s32.totalorder %s29_s20, %s291_s21  ;;  %p297_p7 = scmp.lt.s32.totalorder %s291_s21, %s291_s21 }
  0x13   :  { %p298_p8 = por %p297_p7, %p296_p6 }
  0x15   :  { %p299_p9 = pnand %p298_p8, %p292_p5 }
  0x17   :  { %302 = shalt.err (!%p299_p9)
}
  0x18   :  { %34 = dma.hbm_to_vmem [thread:$0]  %s382_s1, 512, %s29_s20, [#allocation6], %s330_s15, %s330_s15, %s331_s16  }
  0x19   :  { %323 = dma.done.wait [#allocation3], 1024  }
  0x1a   :  { %324 = vsyncadd [#allocation3], 4294966272 }
  0x1b   :  { %325 = dma.done.wait [#allocation6], 512  }
  0x1c   :  { %326 = vsyncadd [#allocation6], 4294966784  ;;  %v333_v0 = vmov 0.0   ;;  %vm334_vm0 = vmmov 0   ;;  %vm51_vm1 = vcmask 261120   ;;  %v119_v1 = vld [vmem:[#allocation5 + $0x18] sm:$0xff] }
  0x1d   :  { %245 = vmatprep.subr.mxu0 %v333_v0  ;;  %253 = vmatprep.mubr.msk.f32.mxu0 %vm334_vm0, %v333_v0  ;;  %v118_v2 = vld [vmem:[#allocation5 + $0x10] sm:$0xff]  ;;  %v117_v3 = vld [vmem:[#allocation5 + $0x8] sm:$0xff]  ;;  %v43_v4 = vld [vmem:[#allocation2] sm:$0xff]  ;;  %vm135_vm2 = vcmask 1041409   ;;  %vm137_vm3 = vcmask 1042434   ;;  %vm139_vm4 = vcmask 1043459  }
  0x1e   :  { %246 = vmatpush3.msra.mxu0 %v119_v1  ;;  %v44_v5 = vld [vmem:[#allocation2 + $0x8] sm:$0xff]  ;;  %v45_v6 = vld [vmem:[#allocation2 + $0x10] sm:$0xff]  ;;  %v46_v7 = vld [vmem:[#allocation2 + $0x18] sm:$0xff]  ;;  %v52_v9 = vsel %vm51_vm1, %v43_v4, 0.0  ;;  %vm141_vm5 = vcmask 1044484   ;;  %vm143_vm6 = vcmask 1045509  }
  0x1f   :  { %247 = vmatprep.subr.mxu0 %v333_v0  ;;  %v47_v8 = vld [vmem:[#allocation2 + $0x20] sm:$0xff]  ;;  %v59_v10 = vsel %vm51_vm1, %v44_v5, 0.0  ;;  %v48_v11 = vld [vmem:[#allocation2 + $0x28] sm:$0xff]  ;;  %v49_v12 = vld [vmem:[#allocation2 + $0x30] sm:$0xff]  ;;  %v53_v14 = vrot.slane %v52_v9, 4  ;;  %v66_v16 = vsel %vm51_vm1, %v45_v6, 0.0 }
  0x20   :  { %248 = vmatpush3.msra.mxu0 %v118_v2  ;;  %v50_v13 = vld [vmem:[#allocation2 + $0x38] sm:$0xff]  ;;  %v60_v15 = vrot.slane %v59_v10, 4  ;;  %v116_v17 = vld [vmem:[#allocation5] sm:$0xff]  ;;  %v67_v18 = vrot.slane %v66_v16, 4  ;;  %v73_v19 = vsel %vm51_vm1, %v46_v7, 0.0  ;;  %v80_v20 = vsel %vm51_vm1, %v47_v8, 0.0 }
  0x21   :  { %249 = vmatprep.subr.mxu0 %v333_v0  ;;  %v87_v21 = vsel %vm51_vm1, %v48_v11, 0.0  ;;  %v54_v22 = vadd.f32 %v53_v14, %v52_v9  ;;  %v74_v24 = vrot.slane %v73_v19, 4  ;;  %v81_v25 = vrot.slane %v80_v20, 4  ;;  %s335_s24 = smov [#allocation7]  }
  0x22   :  { %250 = vmatpush3.msra.mxu0 %v117_v3  ;;  %v61_v23 = vadd.f32 %v60_v15, %v59_v10  ;;  %v68_v26 = vadd.f32 %v67_v18, %v66_v16  ;;  %v88_v27 = vrot.slane %v87_v21, 4  ;;  %v94_v28 = vsel %vm51_vm1, %v49_v12, 0.0  ;;  %s228_s25 = sshll.u32 %s335_s24, 4  ;;  %s229_s25 = int_to_ptr.vmem [resolvable:$true] %s228_s25 }
  0x23   :  { %251 = vmatprep.subr.mxu0 %v333_v0  ;;  %v101_v29 = vsel %vm51_vm1, %v50_v13, 0.0  ;;  %v55_v30 = vrot.slane %v54_v22, 2  ;;  %v75_v32 = vadd.f32 %v74_v24, %v73_v19  ;;  %v82_v33 = vadd.f32 %v81_v25, %v80_v20  ;;  %v238_v20 = vld [vmem:[%s383_s2] ss:$0 sm:$0xff]  ;;  %s303_s26 = scalar_lea.vmem %s229_s25, 128  ;;  %p308_p11 = scmp.lt.s32.totalorder %s229_s25, %s229_s25 }
  0x24   :  { %252 = vmatpush3.msra.mxu0 %v116_v17  ;;  %v62_v31 = vrot.slane %v61_v23, 2  ;;  %v69_v34 = vrot.slane %v68_v26, 2  ;;  %v89_v35 = vadd.f32 %v88_v27, %v87_v21  ;;  %v95_v36 = vrot.slane %v94_v28, 4  ;;  %p304_p10 = scmp.ne.s32.totalorder %s229_s25, %s303_s26  ;;  %p309_p12 = scmp.lt.s32.totalorder %s303_s26, %s303_s26 }
  0x25   :  { %v102_v37 = vrot.slane %v101_v29, 4  ;;  %v56_v38 = vadd.f32 %v55_v30, %v54_v22  ;;  %v76_v40 = vrot.slane %v75_v32, 2  ;;  %v83_v41 = vrot.slane %v82_v33, 2 }
  0x26   :  { %v63_v39 = vadd.f32 %v62_v31, %v61_v23  ;;  %v70_v42 = vadd.f32 %v69_v34, %v68_v26  ;;  %v90_v43 = vrot.slane %v89_v35, 2  ;;  %v96_v44 = vadd.f32 %v95_v36, %v94_v28  ;;  %p310_p13 = por %p309_p12, %p308_p11 }
  0x27   :  { %v103_v45 = vadd.f32 %v102_v37, %v101_v29  ;;  %v57_v46 = vrot.slane %v56_v38, 1  ;;  %v77_v48 = vadd.f32 %v76_v40, %v75_v32  ;;  %v84_v49 = vadd.f32 %v83_v41, %v82_v33 }
  0x28   :  { %v64_v47 = vrot.slane %v63_v39, 1  ;;  %v71_v50 = vrot.slane %v70_v42, 1  ;;  %v91_v51 = vadd.f32 %v90_v43, %v89_v35  ;;  %v97_v52 = vrot.slane %v96_v44, 2  ;;  %p311_p0 = pnand %p310_p13, %p304_p10 }
  0x29   :  { %v104_v53 = vrot.slane %v103_v45, 2  ;;  %v58_v54 = vadd.f32 %v57_v46, %v56_v38  ;;  %v78_v56 = vrot.slane %v77_v48, 1  ;;  %v85_v57 = vrot.slane %v84_v49, 1 }
  0x2a   :  { %v65_v55 = vadd.f32 %v64_v47, %v63_v39  ;;  %v72_v58 = vadd.f32 %v71_v50, %v70_v42  ;;  %v92_v59 = vrot.slane %v91_v51, 1  ;;  %v98_v60 = vadd.f32 %v97_v52, %v96_v44 }
  0x2b   :  { %v105_v61 = vadd.f32 %v104_v53, %v103_v45  ;;  %v79_v62 = vadd.f32 %v78_v56, %v77_v48  ;;  %v86_v63 = vadd.f32 %v85_v57, %v84_v49  ;;  %v108_v0 = vmul.f32 0.125, %v58_v54 }
  0x2c   :  { %v109_v1 = vmul.f32 0.125, %v65_v55  ;;  %v93_v2 = vadd.f32 %v92_v59, %v91_v51  ;;  %v99_v3 = vrot.slane %v98_v60, 1  ;;  %v110_v5 = vmul.f32 0.125, %v72_v58 }
  0x2d   :  { %v106_v4 = vrot.slane %v105_v61, 1  ;;  %v111_v6 = vmul.f32 0.125, %v79_v62  ;;  %v112_v7 = vmul.f32 0.125, %v86_v63  ;;  %vm145_vm7 = vcmask 1046534  }
  0x2e   :  { %v136_v8 = vsel %vm135_vm2, %v109_v1, %v108_v0  ;;  %v100_v9 = vadd.f32 %v99_v3, %v98_v60  ;;  %v113_v11 = vmul.f32 0.125, %v93_v2  ;;  %vm147_vm8 = vcmask 1047559  }
  0x2f   :  { %v107_v10 = vadd.f32 %v106_v4, %v105_v61  ;;  %v138_v12 = vsel %vm137_vm3, %v110_v5, %v136_v8 }
  0x30   :  { %v140_v13 = vsel %vm139_vm4, %v111_v6, %v138_v12  ;;  %v114_v14 = vmul.f32 0.125, %v100_v9 }
  0x31   :  { %v115_v15 = vmul.f32 0.125, %v107_v10  ;;  %v142_v16 = vsel %vm141_vm5, %v112_v7, %v140_v13 }
  0x32   :  { %v144_v17 = vsel %vm143_vm6, %v113_v11, %v142_v16 }
  0x33   :  { %v146_v18 = vsel %vm145_vm7, %v114_v14, %v144_v17 }
  0x34   :  { %v148_v19 = vsel %vm147_vm8, %v115_v15, %v146_v18 }
  0x35   :  { %254 = vmatmul.mubr.msk.f32.vlgmr.msra.gmra.mxu0 %vm51_vm1, %v148_v19 }
  0xf5   :  { %v217_v21 = vpop.f32.mrf.mxu0 }
  0xf6   :  { %v218_v22 = vadd.f32 %v238_v20, %v217_v21 }
  0xf7   :  { %v255_v23 = vpop.f32.mrf.mxu0 }
  0xf8   :  { %221 = vst [vmem:[#allocation7] sm:$0xff] %v218_v22 }
  0xf9   :  { %314 = shalt.err (!%p311_p0)
}
  0xfa   :  { %231 = dma.vmem_to_hbm [thread:$0]  %s229_s25, 128, %s384_s3, [#allocation4]  }
  0xfb   :  { %327 = dma.done.wait [#allocation4], 128  }
  0xfc   :  { %328 = vsyncadd [#allocation4], 4294967168 }
  0xfd   :  { %235 = vsyncpa [#allocation3], 1 }
  0xfe   :  { %236 = vsyncpa [#allocation6], 1 }
  0xff   :  { %237 = vsyncpa [#allocation4], 1 }

</bundles_post_ra>
